<compile_context>
chip_gen: v7x
topology: tpu7x:2x2x1
jax: 0.10.0
libtpu: 0.0.40
codegen_flags: <defaults>
</compile_context>

<pallas_src>
import functools

import jax
import jax.numpy as jnp
from jax.experimental import pallas as pl
from jax.experimental.pallas import tpu as pltpu

H_PAD = 128        # padded hidden width (one full lane width)
OUT_PAD = 8        # padded fc3 / output width (true width is 2)
OUT_FEATURES = 2   # true fc3 width


def snet_kernel(x_ref, w1_ref, b1_ref, w2_ref, b2_ref, w3_ref, b3_ref, o_ref):
    # fc1 + ReLU  (bf16 x / W1 on the MXU, f32 accumulation, f32 bias)
    h1 = jnp.dot(x_ref[...], w1_ref[...], preferred_element_type=jnp.float32)
    h1 = jnp.maximum(h1 + b1_ref[...], 0.0)

    # dropout(p=0.2): identity in eval mode (deterministic forward).
    # TODO(synk): training-mode dropout via pltpu.prng_seed + pltpu.prng_random_bits.

    # fc2 + ReLU
    h2 = jnp.dot(h1.astype(jnp.bfloat16), w2_ref[...],
                 preferred_element_type=jnp.float32)
    h2 = jnp.maximum(h2 + b2_ref[...], 0.0)

    # fc3 + sigmoid on the narrow (tb, OUT_PAD) path; true columns are [:, :2].
    h3 = jnp.dot(h2.astype(jnp.bfloat16), w3_ref[...],
                 preferred_element_type=jnp.float32)
    o_ref[...] = jax.nn.sigmoid(h3 + b3_ref[...]).astype(o_ref.dtype)


def _round_up(n, m):
    return ((n + m - 1) // m) * m


def prepare_params(raw_params, n_features):
    """One-time prep: pad hidden widths to 128 and the output width to 8,
    weights -> bf16, biases -> (1, width) f32."""
    w1, b1, w2, b2, w3, b3 = raw_params

    def pad_to(a, shape):
        return jnp.pad(a, [(0, t - s) for s, t in zip(a.shape, shape)])

    w1p = pad_to(w1, (n_features, H_PAD)).astype(jnp.bfloat16)
    w2p = pad_to(w2, (H_PAD, H_PAD)).astype(jnp.bfloat16)
    w3p = pad_to(w3, (H_PAD, OUT_PAD)).astype(jnp.bfloat16)
    b1p = pad_to(b1, (H_PAD,)).astype(jnp.float32).reshape(1, H_PAD)
    b2p = pad_to(b2, (H_PAD,)).astype(jnp.float32).reshape(1, H_PAD)
    b3p = pad_to(b3, (OUT_PAD,)).astype(jnp.float32).reshape(1, OUT_PAD)
    return (w1p, b1p, w2p, b2p, w3p, b3p)


@functools.partial(jax.jit, static_argnames=("block_b",))
def snet_forward(x, padded_params, block_b=2048):
    w1, b1, w2, b2, w3, b3 = padded_params
    B, F = x.shape

    # Batch tile: large (amortizes per-grid-step overhead), multiple of 16
    # (bf16 sublane packing), clamped to the batch so tiny inputs still work.
    tb = min(block_b, _round_up(B, 16))
    # Give the "parallel" batch axis at least 2 grid steps when the batch is
    # big enough, so v7x's 2 TensorCores both get work (no-op on v5e/v6e).
    if _round_up(B, tb) == tb and tb >= 32:
        tb = _round_up(tb // 2, 16)
    b_pad = _round_up(B, tb)

    xb = x.astype(jnp.bfloat16)
    if b_pad != B:
        xb = jnp.pad(xb, ((0, b_pad - B), (0, 0)))

    grid = (b_pad // tb,)
    resident = lambda a: pl.BlockSpec(a.shape, lambda i: (0,) * a.ndim)

    out = pl.pallas_call(
        snet_kernel,
        out_shape=jax.ShapeDtypeStruct((b_pad, OUT_PAD), jnp.float32),
        grid=grid,
        in_specs=[
            pl.BlockSpec((tb, F), lambda i: (i, 0)),   # x streams over batch
            resident(w1), resident(b1),
            resident(w2), resident(b2),
            resident(w3), resident(b3),
        ],
        out_specs=pl.BlockSpec((tb, OUT_PAD), lambda i: (i, 0)),
        compiler_params=pltpu.CompilerParams(
            dimension_semantics=("parallel",),
            vmem_limit_bytes=32 * 1024 * 1024),
    )(xb, w1, b1, w2, b2, w3, b3)

    return out[:B, :OUT_FEATURES]


def init_params(key, n_features):
    # Deterministic init mimicking PyTorch Linear default (uniform in
    # [-1/sqrt(fan_in), 1/sqrt(fan_in)]); weights stored as [in, out].
    def linear(key, fan_in, fan_out):
        kw, kb = jax.random.split(key)
        bound = 1.0 / jnp.sqrt(fan_in)
        w = jax.random.uniform(kw, (fan_in, fan_out), jnp.float32, -bound, bound)
        b = jax.random.uniform(kb, (fan_out,), jnp.float32, -bound, bound)
        return w, b

    k1, k2, k3 = jax.random.split(key, 3)
    w1, b1 = linear(k1, n_features, 64)
    w2, b2 = linear(k2, 64, 32)
    w3, b3 = linear(k3, 32, 2)
    return (w1, b1, w2, b2, w3, b3)


def snet_reference(x, raw_params):
    """Pure-JAX reference mirroring the kernel's bf16-input / f32-accumulate path."""
    w1, b1, w2, b2, w3, b3 = raw_params
    rb = lambda a: a.astype(jnp.bfloat16).astype(jnp.float32)
    dot = functools.partial(jnp.dot, precision=jax.lax.Precision.HIGHEST)
    h1 = jnp.maximum(dot(rb(x), rb(w1)) + b1, 0.0)
    h2 = jnp.maximum(dot(rb(h1), rb(w2)) + b2, 0.0)
    return jax.nn.sigmoid(dot(rb(h2), rb(w3)) + b3)


if __name__ == "__main__":
    key = jax.random.PRNGKey(0)
    k_params, k_x = jax.random.split(key)

    n_features = 16
    batch = 8

    raw_params = init_params(k_params, n_features)
    padded_params = prepare_params(raw_params, n_features)
    x = jax.random.normal(k_x, (batch, n_features), jnp.float32)

    out = snet_forward(x, padded_params)
    out = jax.block_until_ready(out)

    ref = snet_reference(x, raw_params)
    assert out.shape == (batch, OUT_FEATURES), out.shape
    assert jnp.allclose(out, ref, atol=1e-3, rtol=1e-3), float(
        jnp.max(jnp.abs(out - ref)))

    print("KERNEL_OK")
</pallas_src>

<mosaic_0001>
module attributes {stable_mosaic.version = 11 : i64} {
  func.func @snet_kernel(%arg0: i32, %arg1: memref<16x16xbf16, #tpu.memory_space<vmem>>, %arg2: memref<16x128xbf16, #tpu.memory_space<vmem>>, %arg3: memref<1x128xf32, #tpu.memory_space<vmem>>, %arg4: memref<128x128xbf16, #tpu.memory_space<vmem>>, %arg5: memref<1x128xf32, #tpu.memory_space<vmem>>, %arg6: memref<128x8xbf16, #tpu.memory_space<vmem>>, %arg7: memref<1x8xf32, #tpu.memory_space<vmem>>, %arg8: memref<16x8xf32, #tpu.memory_space<vmem>>) attributes {dimension_semantics = [#tpu.dimension_semantics<parallel>], iteration_bounds = array<i64: 1>, scalar_prefetch = 0 : i64, scratch_operands = 0 : i64, tpu.core_type = #tpu.core_type<tc>, window_params = [{transform_indices = @transform_0, window_bounds = array<i64: 16, 16>}, {pipeline_mode = #tpu.pipeline_mode<synchronous>, transform_indices = @transform_1, window_bounds = array<i64: 16, 128>}, {pipeline_mode = #tpu.pipeline_mode<synchronous>, transform_indices = @transform_2, window_bounds = array<i64: 1, 128>}, {pipeline_mode = #tpu.pipeline_mode<synchronous>, transform_indices = @transform_3, window_bounds = array<i64: 128, 128>}, {pipeline_mode = #tpu.pipeline_mode<synchronous>, transform_indices = @transform_4, window_bounds = array<i64: 1, 128>}, {pipeline_mode = #tpu.pipeline_mode<synchronous>, transform_indices = @transform_5, window_bounds = array<i64: 128, 8>}, {pipeline_mode = #tpu.pipeline_mode<synchronous>, transform_indices = @transform_6, window_bounds = array<i64: 1, 8>}, {transform_indices = @transform_7, window_bounds = array<i64: 16, 8>}]} {
    %c0 = arith.constant 0 : index
    %c0_0 = arith.constant 0 : index
    %0 = vector.load %arg1[%c0, %c0_0] : memref<16x16xbf16, #tpu.memory_space<vmem>>, vector<16x16xbf16>
    %c0_1 = arith.constant 0 : index
    %c0_2 = arith.constant 0 : index
    %1 = vector.load %arg2[%c0_1, %c0_2] : memref<16x128xbf16, #tpu.memory_space<vmem>>, vector<16x128xbf16>
    %cst = arith.constant dense<0.000000e+00> : vector<16x128xf32>
    %2 = tpu.matmul %0, %1, %cst {dimension_numbers = #tpu.dot_dimension_numbers<[1], [0], [0], [1], [0, 0, 1, 1], [], []>} : vector<16x16xbf16>, vector<16x128xbf16>, vector<16x128xf32> -> vector<16x128xf32>
    %c0_3 = arith.constant 0 : index
    %c0_4 = arith.constant 0 : index
    %3 = vector.load %arg3[%c0_3, %c0_4] : memref<1x128xf32, #tpu.memory_space<vmem>>, vector<1x128xf32>
    %4 = vector.broadcast %3 : vector<1x128xf32> to vector<16x128xf32>
    %5 = arith.addf %2, %4 : vector<16x128xf32>
    %cst_5 = arith.constant 0.000000e+00 : f32
    %6 = vector.broadcast %cst_5 : f32 to vector<16x128xf32>
    %7 = arith.maximumf %5, %6 : vector<16x128xf32>
    %8 = arith.truncf %7 : vector<16x128xf32> to vector<16x128xbf16>
    %c0_6 = arith.constant 0 : index
    %c0_7 = arith.constant 0 : index
    %9 = vector.load %arg4[%c0_6, %c0_7] : memref<128x128xbf16, #tpu.memory_space<vmem>>, vector<128x128xbf16>
    %cst_8 = arith.constant dense<0.000000e+00> : vector<16x128xf32>
    %10 = tpu.matmul %8, %9, %cst_8 {dimension_numbers = #tpu.dot_dimension_numbers<[1], [0], [0], [1], [0, 0, 1, 1], [], []>} : vector<16x128xbf16>, vector<128x128xbf16>, vector<16x128xf32> -> vector<16x128xf32>
    %c0_9 = arith.constant 0 : index
    %c0_10 = arith.constant 0 : index
    %11 = vector.load %arg5[%c0_9, %c0_10] : memref<1x128xf32, #tpu.memory_space<vmem>>, vector<1x128xf32>
    %12 = vector.broadcast %11 : vector<1x128xf32> to vector<16x128xf32>
    %13 = arith.addf %10, %12 : vector<16x128xf32>
    %cst_11 = arith.constant 0.000000e+00 : f32
    %14 = vector.broadcast %cst_11 : f32 to vector<16x128xf32>
    %15 = arith.maximumf %13, %14 : vector<16x128xf32>
    %16 = arith.truncf %15 : vector<16x128xf32> to vector<16x128xbf16>
    %c0_12 = arith.constant 0 : index
    %c0_13 = arith.constant 0 : index
    %17 = vector.load %arg6[%c0_12, %c0_13] : memref<128x8xbf16, #tpu.memory_space<vmem>>, vector<128x8xbf16>
    %cst_14 = arith.constant dense<0.000000e+00> : vector<16x8xf32>
    %18 = tpu.matmul %16, %17, %cst_14 {dimension_numbers = #tpu.dot_dimension_numbers<[1], [0], [0], [1], [0, 0, 1, 1], [], []>} : vector<16x128xbf16>, vector<128x8xbf16>, vector<16x8xf32> -> vector<16x8xf32>
    %c0_15 = arith.constant 0 : index
    %c0_16 = arith.constant 0 : index
    %19 = vector.load %arg7[%c0_15, %c0_16] : memref<1x8xf32, #tpu.memory_space<vmem>>, vector<1x8xf32>
    %20 = vector.broadcast %19 : vector<1x8xf32> to vector<16x8xf32>
    %21 = arith.addf %18, %20 : vector<16x8xf32>
    %22 = arith.negf %21 : vector<16x8xf32>
    %23 = math.exp %22 : vector<16x8xf32>
    %cst_17 = arith.constant 1.000000e+00 : f32
    %24 = vector.broadcast %cst_17 : f32 to vector<16x8xf32>
    %25 = arith.addf %24, %23 : vector<16x8xf32>
    %26 = arith.divf %24, %25 : vector<16x8xf32>
    %c0_18 = arith.constant 0 : index
    %c0_19 = arith.constant 0 : index
    %27 = vector.load %arg8[%c0_18, %c0_19] : memref<16x8xf32, #tpu.memory_space<vmem>>, vector<16x8xf32>
    tpu.vector_store %arg8[%c0_18, %c0_19], %26 {strides = array<i32>} : memref<16x8xf32, #tpu.memory_space<vmem>>, vector<16x8xf32>,
    return
  }
  func.func @transform_0(%arg0: i32) -> (i32, i32) {
    %c0_i32 = arith.constant 0 : i32
    %c0_i32_0 = arith.constant 0 : i32
    return %arg0, %c0_i32 : i32, i32
  }
  func.func @transform_1(%arg0: i32) -> (i32, i32) {
    %c0_i32 = arith.constant 0 : i32
    %c0_i32_0 = arith.constant 0 : i32
    %c0_i32_1 = arith.constant 0 : i32
    return %c0_i32, %c0_i32_0 : i32, i32
  }
  func.func @transform_2(%arg0: i32) -> (i32, i32) {
    %c0_i32 = arith.constant 0 : i32
    %c0_i32_0 = arith.constant 0 : i32
    %c0_i32_1 = arith.constant 0 : i32
    return %c0_i32, %c0_i32_0 : i32, i32
  }
  func.func @transform_3(%arg0: i32) -> (i32, i32) {
    %c0_i32 = arith.constant 0 : i32
    %c0_i32_0 = arith.constant 0 : i32
    %c0_i32_1 = arith.constant 0 : i32
    return %c0_i32, %c0_i32_0 : i32, i32
  }
  func.func @transform_4(%arg0: i32) -> (i32, i32) {
    %c0_i32 = arith.constant 0 : i32
    %c0_i32_0 = arith.constant 0 : i32
    %c0_i32_1 = arith.constant 0 : i32
    return %c0_i32, %c0_i32_0 : i32, i32
  }
  func.func @transform_5(%arg0: i32) -> (i32, i32) {
    %c0_i32 = arith.constant 0 : i32
    %c0_i32_0 = arith.constant 0 : i32
    %c0_i32_1 = arith.constant 0 : i32
    return %c0_i32, %c0_i32_0 : i32, i32
  }
  func.func @transform_6(%arg0: i32) -> (i32, i32) {
    %c0_i32 = arith.constant 0 : i32
    %c0_i32_0 = arith.constant 0 : i32
    %c0_i32_1 = arith.constant 0 : i32
    return %c0_i32, %c0_i32_0 : i32, i32
  }
  func.func @transform_7(%arg0: i32) -> (i32, i32) {
    %c0_i32 = arith.constant 0 : i32
    %c0_i32_0 = arith.constant 0 : i32
    return %arg0, %c0_i32 : i32, i32
  }
}

</mosaic_0001>

<bundles_post_ra>
// kernel: snet_forward.1
= control target key start
LH: loop header
LB: loop body
LE: loop exit
PB: predicated region body
PF: predicated region fallthrough
CT: control target
= control target key end

     0   :  { %v461_v0 = vmov 0.0   ;;  %vm462_vm0 = vmmov 0   ;;  %vm49_vm1 = vcmask 130048   ;;  %vm336_vm2 = vcmask 64512   ;;  %s592_s1 = inlined_call_operand.vmem [shape: bf16[16,128], index: 1, kind: input, shape index: {}]   ;;  %s593_s0 = inlined_call_operand.vmem [shape: bf16[16,16], index: 0, kind: input, shape index: {}]   ;;  %s594_s3 = inlined_call_operand.vmem [shape: bf16[128,128], index: 3, kind: input, shape index: {}]   ;;  %s595_s5 = inlined_call_operand.vmem [shape: bf16[128,8], index: 5, kind: input, shape index: {}]   ;;  %s596_s2 = inlined_call_operand.vmem [shape: f32[1,128], index: 2, kind: input, shape index: {}]   ;;  %s597_s4 = inlined_call_operand.vmem [shape: f32[1,128], index: 4, kind: input, shape index: {}]   ;;  %s598_s6 = inlined_call_operand.vmem [shape: f32[1,8], index: 6, kind: input, shape index: {}]   ;;  %s599_s7 = inlined_call_operand.vmem [shape: f32[16,8], index: 7, kind: output, shape index: {}]  }
   0x1   :  { %387 = vmatprep.subr.bf16.mxu0 %v461_v0  ;;  %v435_v1 = vld [vmem:[%s592_s1] sm:$0xff]   ;;  %389 = vmatprep.mubr.msk.bf16.mxu0 %vm462_vm0, %v461_v0  ;;  %v438_v4 = vld [vmem:[%s594_s3 + $0x8] sm:$0xff]   ;;  %v439_v5 = vld [vmem:[%s594_s3 + $0x10] sm:$0xff]  }
   0x2   :  { %v436_v2 = vld [vmem:[%s593_s0] sm:$0xff]   ;;  %393 = vmatprep.subr.bf16.mxu1 %v461_v0  ;;  %409 = vmatprep.mubr.msk.bf16.mxu1 %vm462_vm0, %v461_v0  ;;  %v440_v6 = vld [vmem:[%s594_s3 + $0x18] sm:$0xff]   ;;  %v442_v8 = vld [vmem:[%s594_s3 + $0x28] sm:$0xff]  }
   0x3   :  { %388 = vmatpush3.bf16.msra.mxu0 %v435_v1  ;;  %v437_v3 = vld [vmem:[%s594_s3] sm:$0xff]   ;;  %v443_v9 = vld [vmem:[%s594_s3 + $0x30] sm:$0xff]   ;;  %v444_v10 = vld [vmem:[%s594_s3 + $0x38] sm:$0xff]  }
   0x4   :  { %413 = vmatprep.subr.bf16.mxu0 %v461_v0  ;;  %394 = vmatpush3.bf16.msra.mxu1 %v437_v3  ;;  %v441_v7 = vld [vmem:[%s594_s3 + $0x20] sm:$0xff]   ;;  %v446_v12 = vld [vmem:[%s595_s5 + $0x8] sm:$0xff]   ;;  %v447_v13 = vld [vmem:[%s595_s5 + $0x10] sm:$0xff]  }
   0x5   :  { %395 = vmatprep.subr.bf16.mxu1 %v461_v0  ;;  %v445_v11 = vld [vmem:[%s595_s5] sm:$0xff]   ;;  %v448_v14 = vld [vmem:[%s595_s5 + $0x18] sm:$0xff]   ;;  %v450_v16 = vld [vmem:[%s595_s5 + $0x28] sm:$0xff]  }
   0x6   :  { %390 = vmatmul.mubr.msk.bf16.vlgmr.msra.gmra.mrb[0].mxu0 %vm49_vm1, %v436_v2  ;;  %v449_v15 = vld [vmem:[%s595_s5 + $0x20] sm:$0xff]   ;;  %v451_v27 = vld [vmem:[%s595_s5 + $0x30] sm:$0xff]   ;;  %v452_v28 = vld [vmem:[%s595_s5 + $0x38] sm:$0xff]  }
   0x7   :  { %429 = vmatprep.mubr.msk.bf16.mxu0 %vm462_vm0, %v461_v0  ;;  %414 = vmatpush3.bf16.msra.mxu0 %v445_v11  ;;  %v343_v17 = vld [vmem:[%s596_s2] ss:$0 sm:$0xff] }
   0x8   :  { %396 = vmatpush3.bf16.msra.mxu1 %v438_v4  ;;  %415 = vmatprep.subr.bf16.mxu0 %v461_v0  ;;  %v347_v29 = vld [vmem:[%s597_s4] ss:$0 sm:$0xff] }
   0x9   :  { %397 = vmatprep.subr.bf16.mxu1 %v461_v0  ;;  %v356_v39 = vld [vmem:[%s598_s6] ss:$0 sm:$0xff] }
   0xb   :  { %416 = vmatpush3.bf16.msra.mxu0 %v446_v12 }
   0xc   :  { %398 = vmatpush3.bf16.msra.mxu1 %v439_v5  ;;  %417 = vmatprep.subr.bf16.mxu0 %v461_v0 }
   0xd   :  { %399 = vmatprep.subr.bf16.mxu1 %v461_v0 }
   0xf   :  { %418 = vmatpush3.bf16.msra.mxu0 %v447_v13 }
  0x10   :  { %400 = vmatpush3.bf16.msra.mxu1 %v440_v6  ;;  %419 = vmatprep.subr.bf16.mxu0 %v461_v0 }
  0x11   :  { %401 = vmatprep.subr.bf16.mxu1 %v461_v0 }
  0x13   :  { %420 = vmatpush3.bf16.msra.mxu0 %v448_v14 }
  0x14   :  { %402 = vmatpush3.bf16.msra.mxu1 %v441_v7  ;;  %421 = vmatprep.subr.bf16.mxu0 %v461_v0 }
  0x15   :  { %403 = vmatprep.subr.bf16.mxu1 %v461_v0 }
  0x17   :  { %422 = vmatpush3.bf16.msra.mxu0 %v449_v15 }
  0x18   :  { %404 = vmatpush3.bf16.msra.mxu1 %v442_v8  ;;  %423 = vmatprep.subr.bf16.mxu0 %v461_v0 }
  0x19   :  { %405 = vmatprep.subr.bf16.mxu1 %v461_v0 }
  0x1b   :  { %424 = vmatpush3.bf16.msra.mxu0 %v450_v16 }
  0x1c   :  { %406 = vmatpush3.bf16.msra.mxu1 %v443_v9  ;;  %425 = vmatprep.subr.bf16.mxu0 %v461_v0 }
  0x1d   :  { %407 = vmatprep.subr.bf16.mxu1 %v461_v0 }
  0x1f   :  { %426 = vmatpush3.bf16.msra.mxu0 %v451_v27 }
  0x20   :  { %408 = vmatpush3.bf16.msra.mxu1 %v444_v10  ;;  %427 = vmatprep.subr.bf16.mxu0 %v461_v0 }
  0x23   :  { %428 = vmatpush3.bf16.msra.mxu0 %v452_v28 }
  0xd9   :  { %v87_v18 = vpop.f32.mrb[0].mxu0 }
  0xda   :  { %v88_v19 = vadd.f32 %v343_v17, %v87_v18  ;;  %v391_v20 = vpop.f32.mrb[1].mxu0 }
  0xdb   :  { %v90_v21 = vpop.f32.mrb[2].mxu0 }
  0xdc   :  { %v91_v22 = vadd.f32 %v343_v17, %v90_v21  ;;  %v392_v23 = vpop.f32.mrb[3].mxu0  ;;  %v94_v24 = vmax.f32 %v88_v19, 0.0 }
  0xde   :  { %v95_v25 = vmax.f32 %v91_v22, 0.0 }
  0xe0   :  { %v96_v26 = vpack.c.bf16 %v95_v25, %v94_v24 }
  0xe2   :  { %410 = vmatmul.mubr.bf16.vlgmr.msra.gmra.mrb[0].mxu1 %v96_v26 }
 0x1b5   :  { %v202_v30 = vpop.f32.mrb[0].mxu1 }
 0x1b6   :  { %v203_v31 = vadd.f32 %v347_v29, %v202_v30  ;;  %v411_v32 = vpop.f32.mrb[1].mxu1 }
 0x1b7   :  { %v205_v33 = vpop.f32.mrb[2].mxu1 }
 0x1b8   :  { %v206_v34 = vadd.f32 %v347_v29, %v205_v33  ;;  %v412_v35 = vpop.f32.mrb[3].mxu1  ;;  %v209_v36 = vmax.f32 %v203_v31, 0.0 }
 0x1ba   :  { %v210_v37 = vmax.f32 %v206_v34, 0.0 }
 0x1bc   :  { %v211_v38 = vpack.c.bf16 %v210_v37, %v209_v36 }
 0x1be   :  { %430 = vmatmul.mubr.bf16.vlgmr.msra.gmra.mrb[4].mxu0 %v211_v38 }
 0x291   :  { %v317_v40 = vpop.f32.mrb[4].mxu0 }
 0x292   :  { %v318_v41 = vadd.f32 %v356_v39, %v317_v40  ;;  %v431_v42 = vpop.f32.mrb[5].mxu0 }
 0x293   :  { %v320_v43 = vpop.f32.mrb[6].mxu0 }
 0x294   :  { %v365_v44 = vmul.f32 -1.442695, %v318_v41  ;;  %v321_v45 = vadd.f32 %v356_v39, %v320_v43  ;;  %v432_v46 = vpop.f32.mrb[7].mxu0 }
 0x296   :  { %453 = vpow2.f32 %v365_v44  ;;  %v366_v47 = vmul.f32 -1.442695, %v321_v45 }
 0x298   :  { %455 = vpow2.f32 %v366_v47 }
 0x2a0   :  { %v454_v48 = vpop.eup %453 }
 0x2a1   :  { %v330_v49 = vadd.f32 1.0, %v454_v48 }
 0x2a2   :  { %v456_v50 = vpop.eup %455 }
 0x2a3   :  { %457 = vrcp.f32 %v330_v49  ;;  %v331_v51 = vadd.f32 1.0, %v456_v50 }
 0x2a5   :  { %459 = vrcp.f32 %v331_v51 }
 0x2ad   :  { %v458_v52 = vpop.eup %457 }
 0x2ae   :  { %337 = vst.msk [vmem:[%s599_s7] sm:$0xff] %vm336_vm2, %v458_v52 }
 0x2af   :  { %v460_v53 = vpop.eup %459 }
 0x2b0   :  { %338 = vst.msk [vmem:[%s599_s7 + $0x8] sm:$0xff] %vm336_vm2, %v460_v53 }

</bundles_post_ra>
